<compile_context>
chip_gen: v6e
topology: v6e:2x2x1
jax: 0.10.0
libtpu: 0.0.40
codegen_flags: <defaults>
</compile_context>

<pallas_src>
import jax
import jax.numpy as jnp
from jax.experimental import pallas as pl
from jax.experimental.pallas import tpu as pltpu

# ----- model config (Net2(base_model='resnet18', embedding_dim=32)) -----
N_OUT = 512           # resnet18 feature dim
EMB_DIM = 32          # embedding_dim
NUM_EMB = 18          # num_embeddings
NUM_EMB_PAD = 128     # lane-dense padded one-hot / fused-table width
DIM_OUT = 5           # dim_out
OUT_PAD = 128         # lane-dense padded output width (sliced to 5 outside)
MAX_NORM = 4.0        # max_norm, norm_type=1 (L1)
# comb_embedd='multiply', activation_fun=None (identity), dropout -> eval identity


def net2_head_kernel(ids_ref, feat_ref, fused_ref, wfc_ref, bfc_ref, out_ref):
    """One batch tile: onehot(ids) @ fused  ->  * feats  ->  @ w_fc + b_fc."""
    bb = ids_ref.shape[0]
    ids = ids_ref[...]                                            # (bb, 1) int32

    # One-hot lookup of the pre-fused (renorm + linear_embedding + bias) table.
    onehot = (ids == jax.lax.broadcasted_iota(
        jnp.int32, (bb, NUM_EMB_PAD), 1)).astype(fused_ref.dtype)  # (bb, 128)
    proj = jnp.dot(onehot, fused_ref[...],
                   preferred_element_type=jnp.float32)             # (bb, 512) f32

    # activation_fun=None -> identity; dropout(p=0.1) in eval -> identity.
    # TODO(synk): training-mode dropout (random mask) not implemented.

    # comb_embedd='multiply' — elementwise in f32 (v5e has no bf16 VPU path).
    combined = feat_ref[...].astype(jnp.float32) * proj            # (bb, 512)

    # fc: lane-dense padded (512, 128) weight; bias broadcast over rows.
    out = jnp.dot(combined.astype(wfc_ref.dtype), wfc_ref[...],
                  preferred_element_type=jnp.float32)              # (bb, 128)
    out_ref[...] = (out + bfc_ref[...]).astype(out_ref.dtype)


def net2_head(ids, feats, emb_table, w_le, b_le, w_fc, b_fc,
              *, block_b=1024, compute_dtype=jnp.float32):
    """ids: (B,1) int32, feats: (B,512) f32 (encoder output). Returns (B,5) f32."""
    B = feats.shape[0]

    # --- algebraic pre-fusion (plain XLA, outside the kernel) ---------------
    l1 = jnp.sum(jnp.abs(emb_table), axis=-1, keepdims=True)
    scale = jnp.where(l1 > MAX_NORM, MAX_NORM / (l1 + 1e-7), 1.0)
    fused = (emb_table * scale) @ w_le + b_le                       # (18, 512)
    fused_pad = jnp.zeros((NUM_EMB_PAD, N_OUT), jnp.float32).at[:NUM_EMB].set(fused)

    # Lane-dense fc weights/bias (zero-padded to 128 output columns).
    w_fc_pad = jnp.zeros((N_OUT, OUT_PAD), jnp.float32).at[:, :DIM_OUT].set(w_fc)
    b_fc_pad = jnp.zeros((1, OUT_PAD), jnp.float32).at[:, :DIM_OUT].set(b_fc)

    # --- batch tiling ---------------------------------------------------------
    # block_b sized so 2x double-buffered feats tiles stay small vs the v7x
    # 64 MiB VMEM / 32 MiB scoped default (1024*512*4B*2 = 4 MiB).
    block_b = int(min(block_b, pl.next_power_of_2(max(B, 8))))
    b_pad = pl.cdiv(B, block_b) * block_b
    if b_pad != B:
        feats = jnp.pad(feats, ((0, b_pad - B), (0, 0)))
        ids = jnp.pad(ids, ((0, b_pad - B), (0, 0)))

    ids = ids.astype(jnp.int32)
    feats = feats.astype(compute_dtype)
    fused_pad = fused_pad.astype(compute_dtype)
    w_fc_pad = w_fc_pad.astype(compute_dtype)

    grid = (b_pad // block_b,)
    out = pl.pallas_call(
        net2_head_kernel,
        out_shape=jax.ShapeDtypeStruct((b_pad, OUT_PAD), jnp.float32),
        grid_spec=pltpu.PrefetchScalarGridSpec(
            num_scalar_prefetch=0,
            grid=grid,
            in_specs=[
                pl.BlockSpec((block_b, 1), lambda i: (i, 0)),          # ids
                pl.BlockSpec((block_b, N_OUT), lambda i: (i, 0)),      # feats
                pl.BlockSpec((NUM_EMB_PAD, N_OUT), lambda i: (0, 0)),  # fused tbl
                pl.BlockSpec((N_OUT, OUT_PAD), lambda i: (0, 0)),      # w_fc pad
                pl.BlockSpec((1, OUT_PAD), lambda i: (0, 0)),          # b_fc pad
            ],
            out_specs=pl.BlockSpec((block_b, OUT_PAD), lambda i: (i, 0)),
        ),
        compiler_params=pltpu.CompilerParams(
            dimension_semantics=("parallel",),
        ),
    )(ids, feats, fused_pad, w_fc_pad, b_fc_pad)

    return out[:B, :DIM_OUT]


# ----------------------------- init + reference -----------------------------
def _xavier_uniform(key, fan_in, fan_out):
    # matches torch.nn.init.xavier_uniform_; stored as (fan_in, fan_out) = W.T
    bound = (6.0 / (fan_in + fan_out)) ** 0.5
    return jax.random.uniform(key, (fan_in, fan_out), jnp.float32, -bound, bound)


def init_params(key):
    k_emb, k_le_w, k_le_b, k_fc_w, k_fc_b = jax.random.split(key, 5)
    # nn.Embedding weight: uniform(-1, 1)
    emb_table = jax.random.uniform(k_emb, (NUM_EMB, EMB_DIM), jnp.float32, -1.0, 1.0)
    # linear_embedding: Linear(EMB_DIM -> N_OUT), xavier_uniform weight
    w_le = _xavier_uniform(k_le_w, EMB_DIM, N_OUT)
    b_le = jax.random.uniform(k_le_b, (1, N_OUT), jnp.float32,
                              -1.0 / EMB_DIM ** 0.5, 1.0 / EMB_DIM ** 0.5)
    # fc: Linear(N_OUT -> DIM_OUT), xavier_uniform weight
    w_fc = _xavier_uniform(k_fc_w, N_OUT, DIM_OUT)
    b_fc = jax.random.uniform(k_fc_b, (1, DIM_OUT), jnp.float32,
                              -1.0 / N_OUT ** 0.5, 1.0 / N_OUT ** 0.5)
    return emb_table, w_le, b_le, w_fc, b_fc


def reference(ids, feats, emb_table, w_le, b_le, w_fc, b_fc):
    emb = emb_table[ids[:, 0]]
    l1 = jnp.sum(jnp.abs(emb), axis=-1, keepdims=True)
    emb = emb * jnp.where(l1 > MAX_NORM, MAX_NORM / (l1 + 1e-7), 1.0)
    proj = emb @ w_le + b_le
    combined = feats * proj
    return combined @ w_fc + b_fc


if __name__ == "__main__":
    key = jax.random.PRNGKey(0)
    k_params, k_feat, k_id = jax.random.split(key, 3)

    emb_table, w_le, b_le, w_fc, b_fc = init_params(k_params)

    # Primary check at the module's small shapes (B=2 encoder features).
    B = 2
    feats = jax.random.normal(k_feat, (B, N_OUT), jnp.float32)
    ids = jax.random.randint(k_id, (B, 1), 0, NUM_EMB, jnp.int32)

    out = net2_head(ids, feats, emb_table, w_le, b_le, w_fc, b_fc)
    out = jax.block_until_ready(out)
    ref = reference(ids, feats, emb_table, w_le, b_le, w_fc, b_fc)
    assert out.shape == (B, DIM_OUT)
    assert jnp.allclose(out, ref, atol=1e-4, rtol=1e-4), (out, ref)

    # Secondary check exercising the batch grid (multiple tiles + padding).
    B2 = 300
    k_feat2, k_id2 = jax.random.split(jax.random.PRNGKey(1))
    feats2 = jax.random.normal(k_feat2, (B2, N_OUT), jnp.float32)
    ids2 = jax.random.randint(k_id2, (B2, 1), 0, NUM_EMB, jnp.int32)
    out2 = jax.block_until_ready(
        net2_head(ids2, feats2, emb_table, w_le, b_le, w_fc, b_fc, block_b=128))
    ref2 = reference(ids2, feats2, emb_table, w_le, b_le, w_fc, b_fc)
    assert out2.shape == (B2, DIM_OUT)
    assert jnp.allclose(out2, ref2, atol=1e-4, rtol=1e-4)

    print("KERNEL_OK")
</pallas_src>

<mosaic_0001>
module attributes {stable_mosaic.version = 11 : i64} {
  func.func @net2_head_kernel(%arg0: i32, %arg1: memref<8x1xi32, #tpu.memory_space<vmem>>, %arg2: memref<8x512xf32, #tpu.memory_space<vmem>>, %arg3: memref<128x512xf32, #tpu.memory_space<vmem>>, %arg4: memref<512x128xf32, #tpu.memory_space<vmem>>, %arg5: memref<1x128xf32, #tpu.memory_space<vmem>>, %arg6: memref<8x128xf32, #tpu.memory_space<vmem>>) attributes {dimension_semantics = [#tpu.dimension_semantics<parallel>], iteration_bounds = array<i64: 1>, scalar_prefetch = 0 : i64, scratch_operands = 0 : i64, tpu.core_type = #tpu.core_type<tc>, window_params = [{transform_indices = @transform_0, window_bounds = array<i64: 8, 1>}, {transform_indices = @transform_1, window_bounds = array<i64: 8, 512>}, {pipeline_mode = #tpu.pipeline_mode<synchronous>, transform_indices = @transform_2, window_bounds = array<i64: 128, 512>}, {pipeline_mode = #tpu.pipeline_mode<synchronous>, transform_indices = @transform_3, window_bounds = array<i64: 512, 128>}, {pipeline_mode = #tpu.pipeline_mode<synchronous>, transform_indices = @transform_4, window_bounds = array<i64: 1, 128>}, {transform_indices = @transform_5, window_bounds = array<i64: 8, 128>}]} {
    %c0 = arith.constant 0 : index
    %c0_0 = arith.constant 0 : index
    %0 = vector.load %arg1[%c0, %c0_0] : memref<8x1xi32, #tpu.memory_space<vmem>>, vector<8x1xi32>
    %1 = tpu.iota {dimensions = array<i32: 1>} : vector<8x128xi32>
    %2 = vector.broadcast %0 : vector<8x1xi32> to vector<8x128xi32>
    %3 = arith.cmpi eq, %2, %1 : vector<8x128xi32>
    %4 = arith.extui %3 : vector<8x128xi1> to vector<8x128xi32>
    %5 = arith.sitofp %4 : vector<8x128xi32> to vector<8x128xf32>
    %c0_1 = arith.constant 0 : index
    %c0_2 = arith.constant 0 : index
    %6 = vector.load %arg3[%c0_1, %c0_2] : memref<128x512xf32, #tpu.memory_space<vmem>>, vector<128x512xf32>
    %cst = arith.constant dense<0.000000e+00> : vector<8x512xf32>
    %7 = tpu.matmul %5, %6, %cst {dimension_numbers = #tpu.dot_dimension_numbers<[1], [0], [0], [1], [0, 0, 1, 1], [], []>} : vector<8x128xf32>, vector<128x512xf32>, vector<8x512xf32> -> vector<8x512xf32>
    %c0_3 = arith.constant 0 : index
    %c0_4 = arith.constant 0 : index
    %8 = vector.load %arg2[%c0_3, %c0_4] : memref<8x512xf32, #tpu.memory_space<vmem>>, vector<8x512xf32>
    %9 = arith.mulf %8, %7 : vector<8x512xf32>
    %c0_5 = arith.constant 0 : index
    %c0_6 = arith.constant 0 : index
    %10 = vector.load %arg4[%c0_5, %c0_6] : memref<512x128xf32, #tpu.memory_space<vmem>>, vector<512x128xf32>
    %cst_7 = arith.constant dense<0.000000e+00> : vector<8x128xf32>
    %11 = tpu.matmul %9, %10, %cst_7 {dimension_numbers = #tpu.dot_dimension_numbers<[1], [0], [0], [1], [0, 0, 1, 1], [], []>} : vector<8x512xf32>, vector<512x128xf32>, vector<8x128xf32> -> vector<8x128xf32>
    %c0_8 = arith.constant 0 : index
    %c0_9 = arith.constant 0 : index
    %12 = vector.load %arg5[%c0_8, %c0_9] : memref<1x128xf32, #tpu.memory_space<vmem>>, vector<1x128xf32>
    %13 = vector.broadcast %12 : vector<1x128xf32> to vector<8x128xf32>
    %14 = arith.addf %11, %13 : vector<8x128xf32>
    %c0_10 = arith.constant 0 : index
    %c0_11 = arith.constant 0 : index
    %15 = vector.load %arg6[%c0_10, %c0_11] : memref<8x128xf32, #tpu.memory_space<vmem>>, vector<8x128xf32>
    tpu.vector_store %arg6[%c0_10, %c0_11], %14 {strides = array<i32>} : memref<8x128xf32, #tpu.memory_space<vmem>>, vector<8x128xf32>,
    return
  }
  func.func @transform_0(%arg0: i32) -> (i32, i32) {
    %c0_i32 = arith.constant 0 : i32
    %c0_i32_0 = arith.constant 0 : i32
    return %arg0, %c0_i32 : i32, i32
  }
  func.func @transform_1(%arg0: i32) -> (i32, i32) {
    %c0_i32 = arith.constant 0 : i32
    %c0_i32_0 = arith.constant 0 : i32
    return %arg0, %c0_i32 : i32, i32
  }
  func.func @transform_2(%arg0: i32) -> (i32, i32) {
    %c0_i32 = arith.constant 0 : i32
    %c0_i32_0 = arith.constant 0 : i32
    %c0_i32_1 = arith.constant 0 : i32
    return %c0_i32, %c0_i32_0 : i32, i32
  }
  func.func @transform_3(%arg0: i32) -> (i32, i32) {
    %c0_i32 = arith.constant 0 : i32
    %c0_i32_0 = arith.constant 0 : i32
    %c0_i32_1 = arith.constant 0 : i32
    return %c0_i32, %c0_i32_0 : i32, i32
  }
  func.func @transform_4(%arg0: i32) -> (i32, i32) {
    %c0_i32 = arith.constant 0 : i32
    %c0_i32_0 = arith.constant 0 : i32
    %c0_i32_1 = arith.constant 0 : i32
    return %c0_i32, %c0_i32_0 : i32, i32
  }
  func.func @transform_5(%arg0: i32) -> (i32, i32) {
    %c0_i32 = arith.constant 0 : i32
    %c0_i32_0 = arith.constant 0 : i32
    return %arg0, %c0_i32 : i32, i32
  }
}

</mosaic_0001>

<bundles_post_ra>
// kernel: tpu_custom_call.1
= control target key start
LH: loop header
LB: loop body
LE: loop exit
PB: predicated region body
PF: predicated region fallthrough
CT: control target
= control target key end

     0   :  { %10 = vsyncpa [#allocation3], 0  ;;  %s742_s0 = inlined_call_operand.vmem [shape: s32[8,1], index: 0, kind: input, shape index: {}]   ;;  %s743_s1 = inlined_call_operand.hbm [shape: f32[8,512], index: 1, kind: input, shape index: {}]   ;;  %s744_s2 = inlined_call_operand.hbm [shape: f32[128,512], index: 2, kind: input, shape index: {}]   ;;  %s745_s3 = inlined_call_operand.hbm [shape: f32[512,128], index: 3, kind: input, shape index: {}]   ;;  %s746_s4 = inlined_call_operand.vmem [shape: f32[1,128], index: 4, kind: input, shape index: {}]   ;;  %s747_s5 = inlined_call_operand.hbm [shape: f32[8,128], index: 5, kind: output, shape index: {}]  }
   0x1   :  { %11 = vsyncpa [#allocation6], 0 }
   0x2   :  { %12 = vsyncpa [#allocation4], 0  ;;  %s683_s18 = smov [#allocation5]  }
   0x3   :  { %s30_s19 = sshll.u32 %s683_s18, 4  ;;  %s31_s19 = int_to_ptr.vmem [resolvable:$true] %s30_s19 }
   0x4   :  { %s605_s20 = scalar_lea.vmem %s31_s19, 8192  ;;  %p610_p1 = scmp.lt.s32.totalorder %s31_s19, %s31_s19 }
   0x5   :  { %p606_p0 = scmp.ne.s32.totalorder %s31_s19, %s605_s20  ;;  %p611_p2 = scmp.lt.s32.totalorder %s605_s20, %s605_s20 }
   0x7   :  { %p612_p3 = por %p611_p2, %p610_p1 }
   0x9   :  { %p613_p4 = pnand %p612_p3, %p606_p0 }
   0xb   :  { %616 = shalt.err (!%p613_p4)
}
   0xc   :  { %s684_s21 = smov 512   ;;  %s685_s22 = smov 32  }
   0xd   :  { %36 = dma.hbm_to_vmem [thread:$0]  %s744_s2, 8192, %s31_s19, [#allocation6], %s684_s21, %s684_s21, %s685_s22  }
   0xe   :  { %s686_s25 = smov [#allocation2]   ;;  %s687_s27 = smov [#allocation7]  }
   0xf   :  { %s21_s26 = sshll.u32 %s686_s25, 4  ;;  %s42_s28 = sshll.u32 %s687_s27, 4  ;;  %s22_s26 = int_to_ptr.vmem [resolvable:$true] %s21_s26  ;;  %s43_s28 = int_to_ptr.vmem [resolvable:$true] %s42_s28 }
  0x10   :  { %s625_s29 = scalar_lea.vmem %s22_s26, 512  ;;  %p630_p6 = scmp.lt.s32.totalorder %s22_s26, %s22_s26 }
  0x11   :  { %p626_p5 = scmp.ne.s32.totalorder %s22_s26, %s625_s29  ;;  %p631_p7 = scmp.lt.s32.totalorder %s625_s29, %s625_s29 }
  0x13   :  { %p632_p8 = por %p631_p7, %p630_p6 }
  0x15   :  { %p633_p9 = pnand %p632_p8, %p626_p5 }
  0x17   :  { %636 = shalt.err (!%p633_p9)
}
  0x18   :  { %24 = dma.hbm_to_vmem [thread:$0]  %s743_s1, 512, %s22_s26, [#allocation3]  }
  0x19   :  { %s645_s7 = scalar_lea.vmem %s43_s28, 8192  ;;  %p650_p11 = scmp.lt.s32.totalorder %s43_s28, %s43_s28 }
  0x1a   :  { %p646_p10 = scmp.ne.s32.totalorder %s43_s28, %s645_s7  ;;  %p651_p12 = scmp.lt.s32.totalorder %s645_s7, %s645_s7 }
  0x1c   :  { %p652_p13 = por %p651_p12, %p650_p11 }
  0x1e   :  { %p653_p0 = pnand %p652_p13, %p646_p10 }
  0x20   :  { %656 = shalt.err (!%p653_p0)
}
  0x21   :  { %s688_s2 = smov 128   ;;  %s689_s8 = smov 8  }
  0x22   :  { %48 = dma.hbm_to_vmem [thread:$0]  %s745_s3, 8192, %s43_s28, [#allocation6], %s688_s2, %s688_s2, %s689_s8  }
  0x23   :  { %677 = dma.done.wait [#allocation3], 512  }
  0x24   :  { %678 = vsyncadd [#allocation3], 4294966784 }
  0x25   :  { %679 = dma.done.wait [#allocation6], 16384  }
  0x26   :  { %680 = vsyncadd [#allocation6], 4294950912  ;;  %v690_v0 = vmov 0   ;;  %v691_v1 = vmov 0.0   ;;  %v60_v2 = vld [vmem:[%s742_s0] sm:$0xff]  ;;  %v130_v3 = vld [vmem:[#allocation5 + $0x1e8] sm:$0xff] }
  0x27   :  { %596 = vset.pattern.permute.xlu0 %v690_v0  ;;  %197 = vmatprep.mubr.f32.mxu0 %v691_v1  ;;  %v132_v4 = vld [vmem:[#allocation5 + $0x1f8] sm:$0xff]  ;;  %v129_v5 = vld [vmem:[#allocation5 + $0x1e0] sm:$0xff]  ;;  %v131_v6 = vld [vmem:[#allocation5 + $0x1f0] sm:$0xff]  ;;  %s693_s12 = smov [#allocation8]  }
  0x28   :  { %268 = vmatprep.mubr.f32.mxu1 %v691_v1  ;;  %64 = vperm.xlu0 %596, %v60_v2   ;;  %v126_v7 = vld [vmem:[#allocation5 + $0x1c8] sm:$0xff]  ;;  %v128_v8 = vld [vmem:[#allocation5 + $0x1d8] sm:$0xff]  ;;  %v125_v9 = vld [vmem:[#allocation5 + $0x1c0] sm:$0xff]  ;;  %s501_s13 = sshll.u32 %s693_s12, 4  ;;  %s502_s13 = int_to_ptr.vmem [resolvable:$true] %s501_s13 }
  0x29   :  { %133 = vmatprep.subr.mxu0 %v130_v3  ;;  %204 = vmatprep.subr.mxu1 %v132_v4  ;;  %v127_v10 = vld [vmem:[#allocation5 + $0x1d0] sm:$0xff]  ;;  %v122_v11 = vld [vmem:[#allocation5 + $0x1a8] sm:$0xff]  ;;  %v124_v12 = vld [vmem:[#allocation5 + $0x1b8] sm:$0xff]  ;;  %s657_s14 = scalar_lea.vmem %s502_s13, 128  ;;  %p662_p2 = scmp.lt.s32.totalorder %s502_s13, %s502_s13 }
  0x2a   :  { %134 = vmatpush1.msra.mxu0 %v129_v5  ;;  %205 = vmatpush1.msra.mxu1 %v131_v6  ;;  %v121_v13 = vld [vmem:[#allocation5 + $0x1a0] sm:$0xff]  ;;  %v123_v14 = vld [vmem:[#allocation5 + $0x1b0] sm:$0xff]  ;;  %v118_v15 = vld [vmem:[#allocation5 + $0x188] sm:$0xff]  ;;  %v61_v5 = vlaneseq  ;;  %p658_p1 = scmp.ne.s32.totalorder %s502_s13, %s657_s14  ;;  %p663_p3 = scmp.lt.s32.totalorder %s657_s14, %s657_s14 }
  0x2b   :  { %135 = vmatprep.subr.mxu0 %v126_v7  ;;  %206 = vmatprep.subr.mxu1 %v128_v8  ;;  %v120_v16 = vld [vmem:[#allocation5 + $0x198] sm:$0xff]  ;;  %v117_v17 = vld [vmem:[#allocation5 + $0x180] sm:$0xff]  ;;  %v119_v18 = vld [vmem:[#allocation5 + $0x190] sm:$0xff] }
  0x2c   :  { %136 = vmatpush1.msra.mxu0 %v125_v9  ;;  %207 = vmatpush1.msra.mxu1 %v127_v10  ;;  %v114_v19 = vld [vmem:[#allocation5 + $0x168] sm:$0xff]  ;;  %v116_v20 = vld [vmem:[#allocation5 + $0x178] sm:$0xff]  ;;  %v113_v21 = vld [vmem:[#allocation5 + $0x160] sm:$0xff]  ;;  %v62_v6 = vand.u32 127, %v61_v5  ;;  %p664_p4 = por %p663_p3, %p662_p2 }
  0x2d   :  { %137 = vmatprep.subr.mxu0 %v122_v11  ;;  %208 = vmatprep.subr.mxu1 %v124_v12  ;;  %v115_v22 = vld [vmem:[#allocation5 + $0x170] sm:$0xff]  ;;  %v110_v23 = vld [vmem:[#allocation5 + $0x148] sm:$0xff]  ;;  %v112_v24 = vld [vmem:[#allocation5 + $0x158] sm:$0xff]  ;;  %v692_v12 = vmov 1.0  }
  0x2e   :  { %138 = vmatpush1.msra.mxu0 %v121_v13  ;;  %209 = vmatpush1.msra.mxu1 %v123_v14  ;;  %v109_v25 = vld [vmem:[#allocation5 + $0x140] sm:$0xff]  ;;  %v111_v26 = vld [vmem:[#allocation5 + $0x150] sm:$0xff]  ;;  %v106_v27 = vld [vmem:[#allocation5 + $0x128] sm:$0xff]  ;;  %p665_p5 = pnand %p664_p4, %p658_p1 }
  0x2f   :  { %139 = vmatprep.subr.mxu0 %v118_v15  ;;  %210 = vmatprep.subr.mxu1 %v120_v16  ;;  %v108_v28 = vld [vmem:[#allocation5 + $0x138] sm:$0xff]  ;;  %v105_v29 = vld [vmem:[#allocation5 + $0x120] sm:$0xff]  ;;  %v107_v30 = vld [vmem:[#allocation5 + $0x130] sm:$0xff] }
  0x30   :  { %140 = vmatpush1.msra.mxu0 %v117_v17  ;;  %211 = vmatpush1.msra.mxu1 %v119_v18  ;;  %v102_v31 = vld [vmem:[#allocation5 + $0x108] sm:$0xff]  ;;  %v104_v32 = vld [vmem:[#allocation5 + $0x118] sm:$0xff]  ;;  %v101_v33 = vld [vmem:[#allocation5 + $0x100] sm:$0xff] }
  0x31   :  { %141 = vmatprep.subr.mxu0 %v114_v19  ;;  %212 = vmatprep.subr.mxu1 %v116_v20  ;;  %v103_v34 = vld [vmem:[#allocation5 + $0x110] sm:$0xff]  ;;  %v98_v35 = vld [vmem:[#allocation5 + $0xe8] sm:$0xff]  ;;  %v100_v36 = vld [vmem:[#allocation5 + $0xf8] sm:$0xff] }
  0x32   :  { %142 = vmatpush1.msra.mxu0 %v113_v21  ;;  %213 = vmatpush1.msra.mxu1 %v115_v22  ;;  %v97_v37 = vld [vmem:[#allocation5 + $0xe0] sm:$0xff]  ;;  %v99_v38 = vld [vmem:[#allocation5 + $0xf0] sm:$0xff]  ;;  %v94_v39 = vld [vmem:[#allocation5 + $0xc8] sm:$0xff] }
  0x33   :  { %143 = vmatprep.subr.mxu0 %v110_v23  ;;  %214 = vmatprep.subr.mxu1 %v112_v24  ;;  %v96_v40 = vld [vmem:[#allocation5 + $0xd8] sm:$0xff]  ;;  %v93_v41 = vld [vmem:[#allocation5 + $0xc0] sm:$0xff]  ;;  %v95_v42 = vld [vmem:[#allocation5 + $0xd0] sm:$0xff] }
  0x34   :  { %144 = vmatpush1.msra.mxu0 %v109_v25  ;;  %215 = vmatpush1.msra.mxu1 %v111_v26  ;;  %v90_v43 = vld [vmem:[#allocation5 + $0xa8] sm:$0xff]  ;;  %v92_v44 = vld [vmem:[#allocation5 + $0xb8] sm:$0xff]  ;;  %v89_v45 = vld [vmem:[#allocation5 + $0xa0] sm:$0xff] }
  0x35   :  { %145 = vmatprep.subr.mxu0 %v106_v27  ;;  %216 = vmatprep.subr.mxu1 %v108_v28  ;;  %v91_v46 = vld [vmem:[#allocation5 + $0xb0] sm:$0xff]  ;;  %v86_v47 = vld [vmem:[#allocation5 + $0x88] sm:$0xff]  ;;  %v88_v48 = vld [vmem:[#allocation5 + $0x98] sm:$0xff] }
  0x36   :  { %146 = vmatpush1.msra.mxu0 %v105_v29  ;;  %217 = vmatpush1.msra.mxu1 %v107_v30  ;;  %v85_v49 = vld [vmem:[#allocation5 + $0x80] sm:$0xff]  ;;  %v87_v50 = vld [vmem:[#allocation5 + $0x90] sm:$0xff]  ;;  %v82_v51 = vld [vmem:[#allocation5 + $0x68] sm:$0xff] }
  0x37   :  { %147 = vmatprep.subr.mxu0 %v102_v31  ;;  %218 = vmatprep.subr.mxu1 %v104_v32  ;;  %v84_v52 = vld [vmem:[#allocation5 + $0x78] sm:$0xff]  ;;  %v81_v53 = vld [vmem:[#allocation5 + $0x60] sm:$0xff]  ;;  %v83_v54 = vld [vmem:[#allocation5 + $0x70] sm:$0xff] }
  0x38   :  { %148 = vmatpush1.msra.mxu0 %v101_v33  ;;  %219 = vmatpush1.msra.mxu1 %v103_v34  ;;  %v78_v55 = vld [vmem:[#allocation5 + $0x48] sm:$0xff]  ;;  %v80_v56 = vld [vmem:[#allocation5 + $0x58] sm:$0xff]  ;;  %v77_v57 = vld [vmem:[#allocation5 + $0x40] sm:$0xff] }
  0x39   :  { %149 = vmatprep.subr.mxu0 %v98_v35  ;;  %220 = vmatprep.subr.mxu1 %v100_v36  ;;  %v79_v58 = vld [vmem:[#allocation5 + $0x50] sm:$0xff]  ;;  %v74_v59 = vld [vmem:[#allocation5 + $0x28] sm:$0xff]  ;;  %v76_v60 = vld [vmem:[#allocation5 + $0x38] sm:$0xff] }
  0x3a   :  { %150 = vmatpush1.msra.mxu0 %v97_v37  ;;  %221 = vmatpush1.msra.mxu1 %v99_v38  ;;  %v73_v61 = vld [vmem:[#allocation5 + $0x20] sm:$0xff]  ;;  %v75_v62 = vld [vmem:[#allocation5 + $0x30] sm:$0xff]  ;;  %v70_v63 = vld [vmem:[#allocation5 + $0x8] sm:$0xff] }
  0x3b   :  { %151 = vmatprep.subr.mxu0 %v94_v39  ;;  %222 = vmatprep.subr.mxu1 %v96_v40  ;;  %v72_v0 = vld [vmem:[#allocation5 + $0x18] sm:$0xff]  ;;  %v69_v1 = vld [vmem:[#allocation5] sm:$0xff]  ;;  %v71_v2 = vld [vmem:[#allocation5 + $0x10] sm:$0xff] }
  0x3c   :  { %152 = vmatpush1.msra.mxu0 %v93_v41  ;;  %223 = vmatpush1.msra.mxu1 %v95_v42  ;;  %v314_v3 = vld [vmem:[#allocation7 + $0xf8] sm:$0xff]  ;;  %v313_v10 = vld [vmem:[#allocation7 + $0xf0] sm:$0xff]  ;;  %v312_v15 = vld [vmem:[#allocation7 + $0xe8] sm:$0xff] }
  0x3d   :  { %153 = vmatprep.subr.mxu0 %v90_v43  ;;  %224 = vmatprep.subr.mxu1 %v92_v44  ;;  %v346_v4 = vld [vmem:[#allocation7 + $0x1f8] sm:$0xff]  ;;  %v345_v11 = vld [vmem:[#allocation7 + $0x1f0] sm:$0xff]  ;;  %v344_v16 = vld [vmem:[#allocation7 + $0x1e8] sm:$0xff] }
  0x3e   :  { %154 = vmatpush1.msra.mxu0 %v89_v45  ;;  %225 = vmatpush1.msra.mxu1 %v91_v46  ;;  %v298_v8 = vld [vmem:[#allocation7 + $0x78] sm:$0xff]  ;;  %v297_v13 = vld [vmem:[#allocation7 + $0x70] sm:$0xff]  ;;  %v296_v17 = vld [vmem:[#allocation7 + $0x68] sm:$0xff] }
  0x3f   :  { %155 = vmatprep.subr.mxu0 %v86_v47  ;;  %226 = vmatprep.subr.mxu1 %v88_v48  ;;  %v330_v9 = vld [vmem:[#allocation7 + $0x178] sm:$0xff]  ;;  %v329_v14 = vld [vmem:[#allocation7 + $0x170] sm:$0xff]  ;;  %v328_v18 = vld [vmem:[#allocation7 + $0x168] sm:$0xff] }
  0x40   :  { %156 = vmatpush1.msra.mxu0 %v85_v49  ;;  %227 = vmatpush1.msra.mxu1 %v87_v50  ;;  %v311_v19 = vld [vmem:[#allocation7 + $0xe0] sm:$0xff]  ;;  %v310_v23 = vld [vmem:[#allocation7 + $0xd8] sm:$0xff]  ;;  %v309_v27 = vld [vmem:[#allocation7 + $0xd0] sm:$0xff] }
  0x41   :  { %157 = vmatprep.subr.mxu0 %v82_v51  ;;  %228 = vmatprep.subr.mxu1 %v84_v52  ;;  %v343_v20 = vld [vmem:[#allocation7 + $0x1e0] sm:$0xff]  ;;  %v342_v24 = vld [vmem:[#allocation7 + $0x1d8] sm:$0xff]  ;;  %v341_v28 = vld [vmem:[#allocation7 + $0x1d0] sm:$0xff] }
  0x42   :  { %158 = vmatpush1.msra.mxu0 %v81_v53  ;;  %229 = vmatpush1.msra.mxu1 %v83_v54  ;;  %v295_v21 = vld [vmem:[#allocation7 + $0x60] sm:$0xff]  ;;  %v294_v25 = vld [vmem:[#allocation7 + $0x58] sm:$0xff]  ;;  %v293_v29 = vld [vmem:[#allocation7 + $0x50] sm:$0xff] }
  0x43   :  { %159 = vmatprep.subr.mxu0 %v78_v55  ;;  %230 = vmatprep.subr.mxu1 %v80_v56  ;;  %v327_v22 = vld [vmem:[#allocation7 + $0x160] sm:$0xff]  ;;  %v326_v26 = vld [vmem:[#allocation7 + $0x158] sm:$0xff]  ;;  %v325_v30 = vld [vmem:[#allocation7 + $0x150] sm:$0xff] }
  0x44   :  { %160 = vmatpush1.msra.mxu0 %v77_v57  ;;  %231 = vmatpush1.msra.mxu1 %v79_v58  ;;  %v308_v31 = vld [vmem:[#allocation7 + $0xc8] sm:$0xff]  ;;  %v307_v35 = vld [vmem:[#allocation7 + $0xc0] sm:$0xff]  ;;  %v306_v39 = vld [vmem:[#allocation7 + $0xb8] sm:$0xff] }
  0x45   :  { %161 = vmatprep.subr.mxu0 %v74_v59  ;;  %232 = vmatprep.subr.mxu1 %v76_v60  ;;  %v340_v32 = vld [vmem:[#allocation7 + $0x1c8] sm:$0xff]  ;;  %v339_v36 = vld [vmem:[#allocation7 + $0x1c0] sm:$0xff]  ;;  %v338_v40 = vld [vmem:[#allocation7 + $0x1b8] sm:$0xff] }
  0x46   :  { %162 = vmatpush1.msra.mxu0 %v73_v61  ;;  %233 = vmatpush1.msra.mxu1 %v75_v62  ;;  %v292_v33 = vld [vmem:[#allocation7 + $0x48] sm:$0xff]  ;;  %v291_v37 = vld [vmem:[#allocation7 + $0x40] sm:$0xff]  ;;  %v290_v41 = vld [vmem:[#allocation7 + $0x38] sm:$0xff] }
  0x47   :  { %163 = vmatprep.subr.mxu0 %v70_v63  ;;  %234 = vmatprep.subr.mxu1 %v72_v0  ;;  %v324_v34 = vld [vmem:[#allocation7 + $0x148] sm:$0xff]  ;;  %v323_v38 = vld [vmem:[#allocation7 + $0x140] sm:$0xff]  ;;  %v322_v42 = vld [vmem:[#allocation7 + $0x138] sm:$0xff] }
  0x48   :  { %164 = vmatpush1.msra.mxu0 %v69_v1  ;;  %235 = vmatpush1.msra.mxu1 %v71_v2  ;;  %v305_v43 = vld [vmem:[#allocation7 + $0xb0] sm:$0xff]  ;;  %v304_v47 = vld [vmem:[#allocation7 + $0xa8] sm:$0xff]  ;;  %v303_v51 = vld [vmem:[#allocation7 + $0xa0] sm:$0xff] }
  0x49   :  { %515 = vmatprep.subr.mxu0 %v314_v3  ;;  %550 = vmatprep.subr.mxu1 %v346_v4  ;;  %v337_v44 = vld [vmem:[#allocation7 + $0x1b0] sm:$0xff]  ;;  %v336_v48 = vld [vmem:[#allocation7 + $0x1a8] sm:$0xff]  ;;  %v335_v52 = vld [vmem:[#allocation7 + $0x1a0] sm:$0xff] }
  0x4a   :  { %v289_v45 = vld [vmem:[#allocation7 + $0x30] sm:$0xff]  ;;  %v288_v49 = vld [vmem:[#allocation7 + $0x28] sm:$0xff]  ;;  %v287_v53 = vld [vmem:[#allocation7 + $0x20] sm:$0xff] }
  0x4b   :  { %v321_v46 = vld [vmem:[#allocation7 + $0x130] sm:$0xff]  ;;  %v320_v50 = vld [vmem:[#allocation7 + $0x128] sm:$0xff]  ;;  %v319_v54 = vld [vmem:[#allocation7 + $0x120] sm:$0xff] }
  0x4c   :  { %v302_v55 = vld [vmem:[#allocation7 + $0x98] sm:$0xff]  ;;  %v301_v59 = vld [vmem:[#allocation7 + $0x90] sm:$0xff]  ;;  %v300_v63 = vld [vmem:[#allocation7 + $0x88] sm:$0xff] }
  0x4d   :  { %v334_v56 = vld [vmem:[#allocation7 + $0x198] sm:$0xff]  ;;  %v333_v60 = vld [vmem:[#allocation7 + $0x190] sm:$0xff]  ;;  %v332_v0 = vld [vmem:[#allocation7 + $0x188] sm:$0xff] }
  0x4e   :  { %v286_v57 = vld [vmem:[#allocation7 + $0x18] sm:$0xff]  ;;  %v285_v61 = vld [vmem:[#allocation7 + $0x10] sm:$0xff]  ;;  %v284_v1 = vld [vmem:[#allocation7 + $0x8] sm:$0xff] }
  0x4f   :  { %v318_v58 = vld [vmem:[#allocation7 + $0x118] sm:$0xff]  ;;  %v317_v62 = vld [vmem:[#allocation7 + $0x110] sm:$0xff]  ;;  %v316_v2 = vld [vmem:[#allocation7 + $0x108] sm:$0xff] }
  0x50   :  { %v299_v3 = vld [vmem:[#allocation7 + $0x80] sm:$0xff] }
  0x51   :  { %v331_v4 = vld [vmem:[#allocation7 + $0x180] sm:$0xff] }
  0x52   :  { %v283_v5 = vld [vmem:[#allocation7] sm:$0xff] }
  0xa3   :  { %v65_v7 = vpop.permute.xlu0 %64 }
  0xa4   :  { %vm66_vm0 = vcmp.eq.s32.totalorder %v65_v7, %v62_v6  ;;  %v315_v6 = vld [vmem:[#allocation7 + $0x100] sm:$0xff] }
  0xa5   :  { %512 = vmatmul.mubr.msk.f32.vlgmr.msra.gmra.mxu0 %vm66_vm0, %v692_v12  ;;  %513 = vmatmul.mubr.msk.f32.vlgmr.msra.gmra.mxu1 %vm66_vm0, %v692_v12  ;;  %v277_v12 = vld [vmem:[#allocation2 + $0x10] sm:$0xff] }
  0xa6   :  { %516 = vmatpush3.msra.mxu0 %v298_v8  ;;  %551 = vmatpush3.msra.mxu1 %v330_v9  ;;  %v276_v9 = vld [vmem:[#allocation2 + $0x8] sm:$0xff] }
  0xa7   :  { %517 = vmatprep.subr.mxu0 %v313_v10  ;;  %552 = vmatprep.subr.mxu1 %v345_v11  ;;  %v278_v10 = vld [vmem:[#allocation2 + $0x18] sm:$0xff]  ;;  %v275_v11 = vld [vmem:[#allocation2] sm:$0xff] }
  0xa8   :  { %518 = vmatpush3.msra.mxu0 %v297_v13  ;;  %553 = vmatpush3.msra.mxu1 %v329_v14 }
  0xa9   :  { %519 = vmatprep.subr.mxu0 %v312_v15  ;;  %554 = vmatprep.subr.mxu1 %v344_v16 }
  0xaa   :  { %520 = vmatpush3.msra.mxu0 %v296_v17  ;;  %555 = vmatpush3.msra.mxu1 %v328_v18 }
  0xab   :  { %521 = vmatprep.subr.mxu0 %v311_v19  ;;  %556 = vmatprep.subr.mxu1 %v343_v20 }
  0xac   :  { %522 = vmatpush3.msra.mxu0 %v295_v21  ;;  %557 = vmatpush3.msra.mxu1 %v327_v22  ;;  %v514_v21 = vld [vmem:[%s746_s4] ss:$0 sm:$0xff] }
  0xad   :  { %523 = vmatprep.subr.mxu0 %v310_v23  ;;  %558 = vmatprep.subr.mxu1 %v342_v24 }
  0xae   :  { %524 = vmatpush3.msra.mxu0 %v294_v25  ;;  %559 = vmatpush3.msra.mxu1 %v326_v26 }
  0xaf   :  { %525 = vmatprep.subr.mxu0 %v309_v27  ;;  %560 = vmatprep.subr.mxu1 %v341_v28 }
  0xb0   :  { %526 = vmatpush3.msra.mxu0 %v293_v29  ;;  %561 = vmatpush3.msra.mxu1 %v325_v30 }
  0xb1   :  { %527 = vmatprep.subr.mxu0 %v308_v31  ;;  %562 = vmatprep.subr.mxu1 %v340_v32 }
  0xb2   :  { %528 = vmatpush3.msra.mxu0 %v292_v33  ;;  %563 = vmatpush3.msra.mxu1 %v324_v34 }
  0xb3   :  { %529 = vmatprep.subr.mxu0 %v307_v35  ;;  %564 = vmatprep.subr.mxu1 %v339_v36 }
  0xb4   :  { %530 = vmatpush3.msra.mxu0 %v291_v37  ;;  %565 = vmatpush3.msra.mxu1 %v323_v38 }
  0xb5   :  { %531 = vmatprep.subr.mxu0 %v306_v39  ;;  %566 = vmatprep.subr.mxu1 %v338_v40 }
  0xb6   :  { %532 = vmatpush3.msra.mxu0 %v290_v41  ;;  %567 = vmatpush3.msra.mxu1 %v322_v42 }
  0xb7   :  { %533 = vmatprep.subr.mxu0 %v305_v43  ;;  %568 = vmatprep.subr.mxu1 %v337_v44 }
  0xb8   :  { %534 = vmatpush3.msra.mxu0 %v289_v45  ;;  %569 = vmatpush3.msra.mxu1 %v321_v46 }
  0xb9   :  { %535 = vmatprep.subr.mxu0 %v304_v47  ;;  %570 = vmatprep.subr.mxu1 %v336_v48 }
  0xba   :  { %536 = vmatpush3.msra.mxu0 %v288_v49  ;;  %571 = vmatpush3.msra.mxu1 %v320_v50 }
  0xbb   :  { %537 = vmatprep.subr.mxu0 %v303_v51  ;;  %572 = vmatprep.subr.mxu1 %v335_v52 }
  0xbc   :  { %538 = vmatpush3.msra.mxu0 %v287_v53  ;;  %573 = vmatpush3.msra.mxu1 %v319_v54 }
  0xbd   :  { %539 = vmatprep.subr.mxu0 %v302_v55  ;;  %574 = vmatprep.subr.mxu1 %v334_v56 }
  0xbe   :  { %540 = vmatpush3.msra.mxu0 %v286_v57  ;;  %575 = vmatpush3.msra.mxu1 %v318_v58 }
  0xbf   :  { %541 = vmatprep.subr.mxu0 %v301_v59  ;;  %576 = vmatprep.subr.mxu1 %v333_v60 }
  0xc0   :  { %542 = vmatpush3.msra.mxu0 %v285_v61  ;;  %577 = vmatpush3.msra.mxu1 %v317_v62 }
  0xc1   :  { %543 = vmatprep.subr.mxu0 %v300_v63  ;;  %578 = vmatprep.subr.mxu1 %v332_v0 }
  0xc2   :  { %544 = vmatpush3.msra.mxu0 %v284_v1  ;;  %579 = vmatpush3.msra.mxu1 %v316_v2 }
  0xc3   :  { %545 = vmatprep.subr.mxu0 %v299_v3  ;;  %580 = vmatprep.subr.mxu1 %v331_v4 }
  0xc4   :  { %546 = vmatpush3.msra.mxu0 %v283_v5  ;;  %581 = vmatpush3.msra.mxu1 %v315_v6 }
 0x165   :  { %v199_v7 = vpop.f32.mrf.mxu0  ;;  %v270_v8 = vpop.f32.mrf.mxu1 }
 0x166   :  { %v279_v17 = vmul.f32 %v275_v11, %v199_v7  ;;  %v281_v18 = vmul.f32 %v277_v12, %v270_v8 }
 0x167   :  { %v201_v13 = vpop.f32.mrf.mxu0  ;;  %v272_v14 = vpop.f32.mrf.mxu1 }
 0x168   :  { %v280_v15 = vmul.f32 %v276_v9, %v201_v13  ;;  %v282_v16 = vmul.f32 %v278_v10, %v272_v14 }
 0x16a   :  { %418 = vmatprep.mubr.f32.mxu0 %v280_v15  ;;  %488 = vmatprep.mubr.f32.mxu1 %v282_v16 }
 0x16b   :  { %419 = vmatmul.mubr.f32.vlgmr.msra.gmra.mxu0 %v279_v17  ;;  %489 = vmatmul.mubr.f32.vlgmr.msra.gmra.mxu1 %v281_v18 }
 0x22b   :  { %v547_v19 = vpop.f32.mrf.mxu0  ;;  %v582_v20 = vpop.f32.mrf.mxu1 }
 0x22d   :  { %v548_v22 = vpop.f32.mrf.mxu0  ;;  %v583_v23 = vpop.f32.mrf.mxu1 }
 0x22e   :  { %v549_v24 = vadd.f32 %v548_v22, %v547_v19  ;;  %v584_v26 = vadd.f32 %v583_v23, %v582_v20 }
 0x230   :  { %v421_v25 = vadd.f32 %v549_v24, %v514_v21 }
 0x232   :  { %v491_v27 = vadd.f32 %v584_v26, %v421_v25 }
 0x234   :  { %494 = vst [vmem:[#allocation8] sm:$0xff] %v491_v27 }
 0x235   :  { %668 = shalt.err (!%p665_p5)
}
 0x236   :  { %504 = dma.vmem_to_hbm [thread:$0]  %s502_s13, 128, %s747_s5, [#allocation4]  }
 0x237   :  { %681 = dma.done.wait [#allocation4], 128  }
 0x238   :  { %682 = vsyncadd [#allocation4], 4294967168 }
 0x239   :  { %508 = vsyncpa [#allocation3], 1 }
 0x23a   :  { %509 = vsyncpa [#allocation6], 1 }
 0x23b   :  { %510 = vsyncpa [#allocation4], 1 }

</bundles_post_ra>
